<compile_context>
chip_gen: v5e
topology: v5e:2x2
jax: 0.10.0
libtpu: 0.0.40
codegen_flags: <defaults>
</compile_context>

<pallas_src>
import functools

import jax
import jax.numpy as jnp
from jax.experimental import pallas as pl
from jax.experimental.pallas import tpu as pltpu

EPS = 1e-5                       # nn.BatchNorm2d default eps
LANE = 128                       # TPU lane width; channels padded to multiples of this
VMEM_LIMIT = 48 * 1024 * 1024    # explicit cap, fits v7x (64 MiB physical) with headroom


def _round_up(x, m):
    return (x + m - 1) // m * m


def _mosaic(*sem):
    return pltpu.CompilerParams(dimension_semantics=sem, vmem_limit_bytes=VMEM_LIMIT)


# ----------------------------------------------------------------------------
# Pallas kernels
# ----------------------------------------------------------------------------
def _pack_stats(ssum, ssq, c):
    """Pack a (1,C) sum and (1,C) sum-of-squares into an (8,C) tile (rows 0 and 1)."""
    row = jax.lax.broadcasted_iota(jnp.int32, (8, c), 0)
    return jnp.where(row == 0, ssum, jnp.where(row == 1, ssq, 0.0))


def _bn_stats_kernel(x_ref, st_ref):
    # Per-channel partial sum / sum-of-squares over this row block (used for BN1).
    x = x_ref[...].astype(jnp.float32)
    ssum = jnp.sum(x, axis=0, keepdims=True)
    ssq = jnp.sum(x * x, axis=0, keepdims=True)
    st_ref[...] = _pack_stats(ssum, ssq, x_ref.shape[1])[None]


def _bn_apply_relu_pad_kernel(x_ref, scale_ref, shift_ref, o_ref):
    # y = relu(scale * x + shift), written into the interior of a zero spatial pad so the
    # result is directly consumable by the following 3x3 conv kernel.
    _, h, w, c = x_ref.shape
    scale = scale_ref[...].reshape(1, 1, c)
    shift = shift_ref[...].reshape(1, 1, c)
    y = jnp.maximum(x_ref[0].astype(jnp.float32) * scale + shift, 0.0)
    o_ref[...] = jnp.zeros(o_ref.shape, o_ref.dtype)
    o_ref[0, pl.ds(1, h), pl.ds(1, w), :] = y.astype(o_ref.dtype)


def _tap_offsets(kh, kw, stride, cp):
    if stride == 1:
        return kh, kw, 0
    # stride-2 convs read a space-to-depth-by-2 layout: spatial offset (kh//2, kw//2), and
    # the (kh%2, kw%2) phase selects a lane-aligned channel block of width cp.
    return kh // 2, kw // 2, ((kh % 2) * 2 + (kw % 2)) * cp


def _conv_front_kernel(*refs, stride, bh, wo, cp, has_shortcut):
    # conv1: 3x3 conv (stride 1 or 2) accumulated over the 9 taps in f32, plus
    #   * fused 1x1 shortcut conv (the centre tap IS the shortcut's input), and
    #   * per-block partial batch statistics for BN2 (computed on the f32 accumulator).
    if has_shortcut:
        x_ref, w_ref, wsc_ref, c1_ref, sc_ref, st_ref = refs
    else:
        x_ref, w_ref, c1_ref, st_ref = refs
    hb = pl.program_id(1)
    cout = w_ref.shape[2]
    acc = jnp.zeros((bh * wo, cout), jnp.float32)
    center = None
    for kh in range(3):
        for kw in range(3):
            dh, dw, coff = _tap_offsets(kh, kw, stride, cp)
            a = x_ref[0, pl.ds(hb * bh + dh, bh), pl.ds(dw, wo), pl.ds(coff, cp)]
            a = a.reshape(bh * wo, cp)
            if kh == 1 and kw == 1:
                center = a                       # == the 1x1/stride-s shortcut conv input
            acc = acc + jnp.dot(a, w_ref[kh * 3 + kw],
                                preferred_element_type=jnp.float32)
    c1_ref[...] = acc.reshape(1, bh, wo, cout).astype(c1_ref.dtype)
    st_ref[...] = _pack_stats(jnp.sum(acc, axis=0, keepdims=True),
                              jnp.sum(acc * acc, axis=0, keepdims=True), cout)[None]
    if has_shortcut:
        sc = jnp.dot(center, wsc_ref[...], preferred_element_type=jnp.float32)
        sc_ref[...] = sc.reshape(1, bh, wo, cout).astype(sc_ref.dtype)


def _conv_back_kernel(x_ref, w_ref, res_ref, o_ref, *, bh, wo):
    # conv2: 3x3 stride-1 conv fused with the final residual add (torch.add).
    hb = pl.program_id(1)
    cp = w_ref.shape[1]
    cout = w_ref.shape[2]
    acc = jnp.zeros((bh * wo, cout), jnp.float32)
    for kh in range(3):
        for kw in range(3):
            a = x_ref[0, pl.ds(hb * bh + kh, bh), pl.ds(kw, wo), :]
            acc = acc + jnp.dot(a.reshape(bh * wo, cp), w_ref[kh * 3 + kw],
                                preferred_element_type=jnp.float32)
    acc = acc + res_ref[...].reshape(bh * wo, cout).astype(jnp.float32)
    o_ref[...] = acc.reshape(1, bh, wo, cout).astype(o_ref.dtype)


# ----------------------------------------------------------------------------
# Pallas wrappers
# ----------------------------------------------------------------------------
def _pick_bh(ho, wo, cout_p, budget=4 * 1024 * 1024):
    """Largest divisor of ho whose f32 accumulator tile fits the VMEM budget."""
    for bh in range(ho, 0, -1):
        if ho % bh == 0 and bh * wo * cout_p * 4 <= budget:
            return bh
    return 1


def bn_batch_stats(x2d):
    """Per-channel (sum, sum of squares) of an (M, C) matrix, tiled over row blocks."""
    m, c = x2d.shape
    mp = _round_up(m, 8)
    if mp != m:
        x2d = jnp.pad(x2d, ((0, mp - m), (0, 0)))      # zero rows don't change the sums
    bm = next(b for b in (1024, 512, 256, 128, 64, 32, 16, 8) if mp % b == 0)
    nb = mp // bm
    st = pl.pallas_call(
        _bn_stats_kernel,
        out_shape=jax.ShapeDtypeStruct((nb, 8, c), jnp.float32),
        grid=(nb,),
        in_specs=[pl.BlockSpec((bm, c), lambda i: (i, 0))],
        out_specs=pl.BlockSpec((1, 8, c), lambda i: (i, 0, 0)),
        compiler_params=_mosaic("parallel"),
    )(x2d)
    return jnp.sum(st[:, 0, :], axis=0), jnp.sum(st[:, 1, :], axis=0)


def _scale_shift(ssum, ssq, count, gamma_p, beta_p, eps):
    mean = ssum / count
    var = jnp.maximum(ssq / count - mean * mean, 0.0)   # biased variance (training-mode BN)
    scale = gamma_p * jax.lax.rsqrt(var + eps)
    shift = beta_p - mean * scale
    return (scale.reshape(1, -1).astype(jnp.float32),
            shift.reshape(1, -1).astype(jnp.float32))


def bn_apply_relu_pad(x, scale, shift, out_dtype):
    n, h, w, c = x.shape
    return pl.pallas_call(
        _bn_apply_relu_pad_kernel,
        out_shape=jax.ShapeDtypeStruct((n, h + 2, w + 2, c), out_dtype),
        grid=(n,),
        in_specs=[pl.BlockSpec((1, h, w, c), lambda i: (i, 0, 0, 0)),
                  pl.BlockSpec((1, c), lambda i: (0, 0)),
                  pl.BlockSpec((1, c), lambda i: (0, 0))],
        out_specs=pl.BlockSpec((1, h + 2, w + 2, c), lambda i: (i, 0, 0, 0)),
        compiler_params=_mosaic("parallel"),
    )(x, scale, shift)


def conv3x3_front(xp, w, wsc, *, stride, ho, wo, cin_p, out_dtype):
    n = xp.shape[0]
    cout_p = w.shape[2]
    bh = _pick_bh(ho, wo, cout_p)
    n_hb = ho // bh
    has_sc = wsc is not None
    kernel = functools.partial(_conv_front_kernel, stride=stride, bh=bh, wo=wo,
                               cp=cin_p, has_shortcut=has_sc)
    in_specs = [pl.BlockSpec((1,) + xp.shape[1:], lambda i, j: (i, 0, 0, 0)),
                pl.BlockSpec(w.shape, lambda i, j: (0, 0, 0))]
    args = [xp, w]
    out_shape = [jax.ShapeDtypeStruct((n, ho, wo, cout_p), out_dtype)]
    out_specs = [pl.BlockSpec((1, bh, wo, cout_p), lambda i, j: (i, j, 0, 0))]
    if has_sc:
        in_specs.append(pl.BlockSpec(wsc.shape, lambda i, j: (0, 0)))
        args.append(wsc)
        out_shape.append(jax.ShapeDtypeStruct((n, ho, wo, cout_p), jnp.float32))
        out_specs.append(pl.BlockSpec((1, bh, wo, cout_p), lambda i, j: (i, j, 0, 0)))
    out_shape.append(jax.ShapeDtypeStruct((n * n_hb, 8, cout_p), jnp.float32))
    out_specs.append(pl.BlockSpec((1, 8, cout_p), lambda i, j: (i * n_hb + j, 0, 0)))
    outs = pl.pallas_call(
        kernel,
        out_shape=tuple(out_shape),
        grid=(n, n_hb),
        in_specs=in_specs,
        out_specs=tuple(out_specs),
        compiler_params=_mosaic("parallel", "parallel"),
    )(*args)
    if has_sc:
        c1, sc, st = outs
    else:
        c1, st = outs
        sc = None
    return c1, sc, st


def conv3x3_back(xp, w, residual, *, ho, wo):
    n = xp.shape[0]
    cout_p = w.shape[2]
    bh = _pick_bh(ho, wo, cout_p)
    n_hb = ho // bh
    kernel = functools.partial(_conv_back_kernel, bh=bh, wo=wo)
    return pl.pallas_call(
        kernel,
        out_shape=jax.ShapeDtypeStruct((n, ho, wo, cout_p), jnp.float32),
        grid=(n, n_hb),
        in_specs=[pl.BlockSpec((1,) + xp.shape[1:], lambda i, j: (i, 0, 0, 0)),
                  pl.BlockSpec(w.shape, lambda i, j: (0, 0, 0)),
                  pl.BlockSpec((1, bh, wo, cout_p), lambda i, j: (i, j, 0, 0))],
        out_specs=pl.BlockSpec((1, bh, wo, cout_p), lambda i, j: (i, j, 0, 0)),
        compiler_params=_mosaic("parallel", "parallel"),
    )(xp, w, residual)


# ----------------------------------------------------------------------------
# Plain-JAX glue (layout / parameter prep only)
# ----------------------------------------------------------------------------
def _space_to_depth2(xp):
    n, hp, wp, c = xp.shape
    x = xp.reshape(n, hp // 2, 2, wp // 2, 2, c)
    x = jnp.transpose(x, (0, 1, 3, 2, 4, 5))
    return x.reshape(n, hp // 2, wp // 2, 4 * c)


def _pad_last(v, size, value=0.0):
    return jnp.pad(v, (0, size - v.shape[0]), constant_values=value)


def _prep_conv_w(w_oihw, cin_p, cout_p, dtype):
    cout, cin, kh, kw = w_oihw.shape
    w = jnp.transpose(w_oihw, (2, 3, 1, 0)).reshape(kh * kw, cin, cout)
    w = jnp.pad(w, ((0, 0), (0, cin_p - cin), (0, cout_p - cout)))
    return w.astype(dtype)


def init_params(key, in_planes, out_planes):
    ks = jax.random.split(key, 7)

    def conv_w(k, cout, cin, kh, kw):
        fan_in = cin * kh * kw
        return jax.random.normal(k, (cout, cin, kh, kw), jnp.float32) * (2.0 / fan_in) ** 0.5

    p = {
        "bn1_gamma": 1.0 + 0.1 * jax.random.normal(ks[0], (in_planes,), jnp.float32),
        "bn1_beta": 0.1 * jax.random.normal(ks[1], (in_planes,), jnp.float32),
        "w1": conv_w(ks[2], out_planes, in_planes, 3, 3),        # OIHW, like torch
        "bn2_gamma": 1.0 + 0.1 * jax.random.normal(ks[3], (out_planes,), jnp.float32),
        "bn2_beta": 0.1 * jax.random.normal(ks[4], (out_planes,), jnp.float32),
        "w2": conv_w(ks[5], out_planes, out_planes, 3, 3),
    }
    if in_planes != out_planes:
        p["wsc"] = conv_w(ks[6], out_planes, in_planes, 1, 1)    # 1x1 shortcut conv
    return p


# ----------------------------------------------------------------------------
# Forward pass (mirrors BasicBlock.forward)
# ----------------------------------------------------------------------------
def basic_block_forward(x_nchw, params, stride, drop_rate=0.0,
                        compute_dtype=jnp.bfloat16, eps=EPS):
    # TODO(synk): F.dropout for drop_rate > 0 not implemented (module default dropRate=0.0 -> no-op)
    assert drop_rate == 0.0
    assert stride in (1, 2)
    in_planes = x_nchw.shape[1]
    out_planes = params["w1"].shape[0]
    equal_in_out = in_planes == out_planes
    if equal_in_out:
        assert stride == 1, "identity shortcut requires stride 1"

    n, _, h, w = x_nchw.shape
    cin_p = _round_up(in_planes, LANE)
    cout_p = _round_up(out_planes, LANE)
    ho = (h - 1) // stride + 1
    wo = (w - 1) // stride + 1

    # layout glue: NCHW -> NHWC, channel pad to lane multiples.
    # TODO(synk): accepting/returning NHWC at the block boundary would remove these transposes.
    x = jnp.transpose(x_nchw, (0, 2, 3, 1)).astype(jnp.float32)
    x = jnp.pad(x, ((0, 0), (0, 0), (0, 0), (0, cin_p - in_planes)))

    # BN1 batch statistics (tiled Pallas reduction) -> per-channel scale/shift
    s1, q1 = bn_batch_stats(x.reshape(n * h * w, cin_p))
    scale1, shift1 = _scale_shift(
        s1, q1, n * h * w,
        _pad_last(params["bn1_gamma"].astype(jnp.float32), cin_p, 1.0),
        _pad_last(params["bn1_beta"].astype(jnp.float32), cin_p, 0.0), eps)

    # o1 = zero-pad(relu(bn1(x))), fused in one kernel, stored in compute_dtype
    o1p = bn_apply_relu_pad(x, scale1, shift1, compute_dtype)
    if stride == 2:
        assert h % 2 == 0 and w % 2 == 0
        o1p = _space_to_depth2(o1p)     # plain-JAX rearrange so every conv tap is contiguous

    # conv1 (+ fused 1x1 shortcut conv on the centre tap, + BN2 partial stats)
    w1 = _prep_conv_w(params["w1"], cin_p, cout_p, compute_dtype)
    wsc = None
    if not equal_in_out:
        wsc = params["wsc"][:, :, 0, 0].T                          # (cin, cout)
        wsc = jnp.pad(wsc, ((0, cin_p - in_planes),
                            (0, cout_p - out_planes))).astype(compute_dtype)
    c1, sc, st2 = conv3x3_front(o1p, w1, wsc, stride=stride, ho=ho, wo=wo,
                                cin_p=cin_p, out_dtype=compute_dtype)

    # BN2 scale/shift from the fused partial statistics (tiny plain-JAX reduction)
    scale2, shift2 = _scale_shift(
        jnp.sum(st2[:, 0, :], axis=0), jnp.sum(st2[:, 1, :], axis=0), n * ho * wo,
        _pad_last(params["bn2_gamma"].astype(jnp.float32), cout_p, 1.0),
        _pad_last(params["bn2_beta"].astype(jnp.float32), cout_p, 0.0), eps)

    # o2 = zero-pad(relu(bn2(c1)))
    o2p = bn_apply_relu_pad(c1, scale2, shift2, compute_dtype)

    # conv2 fused with the final residual add (residual = x or shortcut-conv output)
    w2 = _prep_conv_w(params["w2"], cout_p, cout_p, compute_dtype)
    residual = x if equal_in_out else sc                            # f32 (n, ho, wo, cout_p)
    out = conv3x3_back(o2p, w2, residual, ho=ho, wo=wo)

    # layout glue back to NCHW, drop the channel padding
    return jnp.transpose(out[..., :out_planes], (0, 3, 1, 2))


# ----------------------------------------------------------------------------
# Pure-JAX reference (correctness check)
# ----------------------------------------------------------------------------
def reference_forward(x_nchw, params, stride, eps=EPS):
    in_planes = x_nchw.shape[1]
    out_planes = params["w1"].shape[0]
    equal_in_out = in_planes == out_planes

    def bn_relu_ref(v, g, b):
        mean = jnp.mean(v, axis=(0, 2, 3), keepdims=True)
        var = jnp.mean((v - mean) ** 2, axis=(0, 2, 3), keepdims=True)
        y = (v - mean) * jax.lax.rsqrt(var + eps)
        y = y * g.reshape(1, -1, 1, 1) + b.reshape(1, -1, 1, 1)
        return jnp.maximum(y, 0.0)

    def conv(v, w, s, pad):
        return jax.lax.conv_general_dilated(
            v, w, (s, s), [(pad, pad), (pad, pad)],
            dimension_numbers=("NCHW", "OIHW", "NCHW"))

    o = bn_relu_ref(x_nchw, params["bn1_gamma"], params["bn1_beta"])
    out = conv(o, params["w1"], stride, 1)
    shortcut = x_nchw if equal_in_out else conv(o, params["wsc"], stride, 0)
    out = bn_relu_ref(out, params["bn2_gamma"], params["bn2_beta"])
    out = conv(out, params["w2"], 1, 1)
    return shortcut + out


if __name__ == "__main__":
    def run_case(seed, in_planes, out_planes, stride, hw, compute_dtype, tol):
        kx, kp = jax.random.split(jax.random.fold_in(jax.random.PRNGKey(0), seed))
        x = jax.random.normal(kx, (2, in_planes, hw, hw), jnp.float32)   # NCHW like PyTorch
        params = init_params(kp, in_planes, out_planes)
        out = basic_block_forward(x, params, stride, compute_dtype=compute_dtype)
        out = jax.block_until_ready(out)
        ref = reference_forward(x, params, stride)
        ho = (hw - 1) // stride + 1
        assert out.shape == (2, out_planes, ho, ho), out.shape
        err = float(jnp.max(jnp.abs(out - ref)) /
                    jnp.maximum(1.0, jnp.max(jnp.abs(ref))))
        if not err < tol:
            raise AssertionError(
                f"mismatch vs reference ({compute_dtype.__name__}, stride={stride}): rel err {err}")

    # non-equalInOut path: 1x1 shortcut conv, stride-2 (space-to-depth conv path)
    run_case(1, 4, 8, 2, 16, jnp.bfloat16, 5e-2)   # bf16 MXU inputs, f32 accumulation
    run_case(1, 4, 8, 2, 16, jnp.float32, 1e-3)    # f32 path, tight check
    # equalInOut path: identity residual, stride-1
    run_case(2, 8, 8, 1, 16, jnp.bfloat16, 5e-2)

    print("KERNEL_OK")
</pallas_src>

<mosaic_0001>
module attributes {stable_mosaic.version = 11 : i64} {
  func.func @_bn_stats_kernel(%arg0: i32, %arg1: memref<512x128xf32, #tpu.memory_space<vmem>>, %arg2: memref<1x8x128xf32, #tpu.memory_space<vmem>>) attributes {dimension_semantics = [#tpu.dimension_semantics<parallel>], iteration_bounds = array<i64: 1>, scalar_prefetch = 0 : i64, scratch_operands = 0 : i64, tpu.core_type = #tpu.core_type<tc>, window_params = [{transform_indices = @transform_0, window_bounds = array<i64: 512, 128>}, {transform_indices = @transform_1, window_bounds = array<i64: 1, 8, 128>}]} {
    %c0 = arith.constant 0 : index
    %c0_0 = arith.constant 0 : index
    %0 = vector.load %arg1[%c0, %c0_0] : memref<512x128xf32, #tpu.memory_space<vmem>>, vector<512x128xf32>
    %cst = arith.constant dense<0.000000e+00> : vector<128xf32>
    %1 = vector.multi_reduction <add>, %0, %cst [0] : vector<512x128xf32> to vector<128xf32>
    %2 = vector.shape_cast %1 : vector<128xf32> to vector<1x128xf32>
    %3 = arith.mulf %0, %0 : vector<512x128xf32>
    %cst_1 = arith.constant dense<0.000000e+00> : vector<128xf32>
    %4 = vector.multi_reduction <add>, %3, %cst_1 [0] : vector<512x128xf32> to vector<128xf32>
    %5 = vector.shape_cast %4 : vector<128xf32> to vector<1x128xf32>
    %6 = tpu.iota {dimensions = array<i32: 0>} : vector<8x128xi32>
    %c0_i32 = arith.constant 0 : i32
    %7 = vector.broadcast %c0_i32 : i32 to vector<8x128xi32>
    %8 = arith.cmpi eq, %6, %7 : vector<8x128xi32>
    %c1_i32 = arith.constant 1 : i32
    %9 = vector.broadcast %c1_i32 : i32 to vector<8x128xi32>
    %10 = arith.cmpi eq, %6, %9 : vector<8x128xi32>
    %cst_2 = arith.constant 0.000000e+00 : f32
    %11 = vector.shape_cast %5 : vector<1x128xf32> to vector<1x128xf32>
    %12 = vector.broadcast %11 : vector<1x128xf32> to vector<8x128xf32>
    %13 = vector.broadcast %cst_2 : f32 to vector<8x128xf32>
    %14 = arith.select %10, %12, %13 : vector<8x128xi1>, vector<8x128xf32>
    %15 = vector.shape_cast %2 : vector<1x128xf32> to vector<1x128xf32>
    %16 = vector.broadcast %15 : vector<1x128xf32> to vector<8x128xf32>
    %17 = arith.select %8, %16, %14 : vector<8x128xi1>, vector<8x128xf32>
    %18 = vector.shape_cast %17 : vector<8x128xf32> to vector<1x8x128xf32>
    %c0_3 = arith.constant 0 : index
    %c0_4 = arith.constant 0 : index
    %c0_5 = arith.constant 0 : index
    %19 = vector.load %arg2[%c0_3, %c0_4, %c0_5] : memref<1x8x128xf32, #tpu.memory_space<vmem>>, vector<1x8x128xf32>
    tpu.vector_store %arg2[%c0_3, %c0_4, %c0_5], %18 {strides = array<i32>} : memref<1x8x128xf32, #tpu.memory_space<vmem>>, vector<1x8x128xf32>,
    return
  }
  func.func @transform_0(%arg0: i32) -> (i32, i32) {
    %c0_i32 = arith.constant 0 : i32
    %c0_i32_0 = arith.constant 0 : i32
    return %arg0, %c0_i32 : i32, i32
  }
  func.func @transform_1(%arg0: i32) -> (i32, i32, i32) {
    %c0_i32 = arith.constant 0 : i32
    %c0_i32_0 = arith.constant 0 : i32
    %c0_i32_1 = arith.constant 0 : i32
    return %arg0, %c0_i32, %c0_i32_0 : i32, i32, i32
  }
}

</mosaic_0001>

<bundles_post_ra>
// kernel: tpu_custom_call.1
= control target key start
LH: loop header
LB: loop body
LE: loop exit
PB: predicated region body
PF: predicated region fallthrough
CT: control target
= control target key end

     0   :  { %6 = vsyncpa [#allocation3], 0  ;;  %s391_s0 = inlined_call_operand.hbm [shape: f32[512,128], index: 0, kind: input, shape index: {}]   ;;  %s392_s1 = inlined_call_operand.hbm [shape: f32[1,8,128], index: 1, kind: output, shape index: {}]  }
   0x1   :  { %7 = vsyncpa [#allocation4], 0  ;;  %s12_s8 = sshll.u32 %s391_s0, 4  ;;  %s371_s9 = smov [#allocation2]   ;;  %s13_s8 = int_to_ptr.hbm [resolvable:$true] %s12_s8 }
   0x2   :  { %s14_s10 = sshll.u32 %s371_s9, 4  ;;  %s372_s11 = smov 128   ;;  %s15_s10 = int_to_ptr.vmem [resolvable:$true] %s14_s10 }
   0x3   :  { %s373_s12 = smov 8  }
   0x4   :  { %20 = dma.hbm_to_vmem [thread:$0]  %s13_s8, 8192, %s15_s10, [#allocation3], %s372_s11, %s372_s11, %s373_s12  }
   0x5   :  { %367 = dma.done.wait [#allocation3], 8192  }
   0x6   :  { %368 = vsyncadd [#allocation3], 4294959104  ;;  %v25_v0 = vld [vmem:[#allocation2] sm:$0xff]  ;;  %v26_v1 = vld [vmem:[#allocation2 + $0x8] sm:$0xff]  ;;  %s374_s0 = smov [#allocation5]   ;;  %s305_s16 = sshll.u32 %s392_s1, 4  ;;  %s306_s16 = int_to_ptr.hbm [resolvable:$true] %s305_s16 }
   0x7   :  { %v27_v2 = vld [vmem:[#allocation2 + $0x10] sm:$0xff]  ;;  %v28_v3 = vld [vmem:[#allocation2 + $0x18] sm:$0xff]  ;;  %v89_v4 = vadd.f32 %v26_v1, %v25_v0  ;;  %v158_v5 = vmul.f32 %v25_v0, %v25_v0  ;;  %v159_v6 = vmul.f32 %v26_v1, %v26_v1  ;;  %v29_v8 = vld [vmem:[#allocation2 + $0x20] sm:$0xff]  ;;  %s303_s13 = sshll.u32 %s374_s0, 4  ;;  %s304_s13 = int_to_ptr.vmem [resolvable:$true] %s303_s13 }
   0x8   :  { %v160_v7 = vmul.f32 %v27_v2, %v27_v2  ;;  %v161_v10 = vmul.f32 %v28_v3, %v28_v3  ;;  %v30_v12 = vld [vmem:[#allocation2 + $0x28] sm:$0xff]  ;;  %v162_v14 = vmul.f32 %v29_v8, %v29_v8  ;;  %v31_v16 = vld [vmem:[#allocation2 + $0x30] sm:$0xff]  ;;  %v32_v20 = vld [vmem:[#allocation2 + $0x38] sm:$0xff] }
   0x9   :  { %v90_v9 = vadd.f32 %v89_v4, %v27_v2  ;;  %v222_v11 = vadd.f32 %v159_v6, %v158_v5  ;;  %v163_v18 = vmul.f32 %v30_v12, %v30_v12  ;;  %v164_v22 = vmul.f32 %v31_v16, %v31_v16  ;;  %v33_v24 = vld [vmem:[#allocation2 + $0x40] sm:$0xff]  ;;  %v34_v28 = vld [vmem:[#allocation2 + $0x48] sm:$0xff]  ;;  %v35_v32 = vld [vmem:[#allocation2 + $0x50] sm:$0xff] }
   0xa   :  { %v165_v26 = vmul.f32 %v32_v20, %v32_v20  ;;  %v166_v30 = vmul.f32 %v33_v24, %v33_v24  ;;  %v167_v34 = vmul.f32 %v34_v28, %v34_v28  ;;  %v36_v36 = vld [vmem:[#allocation2 + $0x58] sm:$0xff]  ;;  %v168_v38 = vmul.f32 %v35_v32, %v35_v32  ;;  %v37_v40 = vld [vmem:[#allocation2 + $0x60] sm:$0xff]  ;;  %v38_v44 = vld [vmem:[#allocation2 + $0x68] sm:$0xff] }
   0xb   :  { %v91_v13 = vadd.f32 %v90_v9, %v28_v3  ;;  %v223_v15 = vadd.f32 %v222_v11, %v160_v7  ;;  %v169_v42 = vmul.f32 %v36_v36, %v36_v36  ;;  %v170_v46 = vmul.f32 %v37_v40, %v37_v40  ;;  %v39_v48 = vld [vmem:[#allocation2 + $0x70] sm:$0xff]  ;;  %v40_v52 = vld [vmem:[#allocation2 + $0x78] sm:$0xff]  ;;  %v41_v56 = vld [vmem:[#allocation2 + $0x80] sm:$0xff] }
   0xc   :  { %v171_v50 = vmul.f32 %v38_v44, %v38_v44  ;;  %v172_v54 = vmul.f32 %v39_v48, %v39_v48  ;;  %v173_v58 = vmul.f32 %v40_v52, %v40_v52  ;;  %v42_v60 = vld [vmem:[#allocation2 + $0x88] sm:$0xff]  ;;  %v174_v62 = vmul.f32 %v41_v56, %v41_v56  ;;  %v43_v0 = vld [vmem:[#allocation2 + $0x90] sm:$0xff]  ;;  %v44_v4 = vld [vmem:[#allocation2 + $0x98] sm:$0xff] }
   0xd   :  { %v92_v17 = vadd.f32 %v91_v13, %v29_v8  ;;  %v224_v19 = vadd.f32 %v223_v15, %v161_v10  ;;  %v175_v2 = vmul.f32 %v42_v60, %v42_v60  ;;  %v176_v6 = vmul.f32 %v43_v0, %v43_v0  ;;  %v45_v8 = vld [vmem:[#allocation2 + $0xa0] sm:$0xff] }
   0xe   :  { %v177_v10 = vmul.f32 %v44_v4, %v44_v4 }
   0xf   :  { %v93_v21 = vadd.f32 %v92_v17, %v30_v12  ;;  %v225_v23 = vadd.f32 %v224_v19, %v162_v14  ;;  %v46_v12 = vld [vmem:[#allocation2 + $0xa8] sm:$0xff]  ;;  %v178_v14 = vmul.f32 %v45_v8, %v45_v8 }
  0x11   :  { %v94_v25 = vadd.f32 %v93_v21, %v31_v16  ;;  %v226_v27 = vadd.f32 %v225_v23, %v163_v18  ;;  %v47_v16 = vld [vmem:[#allocation2 + $0xb0] sm:$0xff]  ;;  %v179_v18 = vmul.f32 %v46_v12, %v46_v12 }
  0x13   :  { %v95_v29 = vadd.f32 %v94_v25, %v32_v20  ;;  %v227_v31 = vadd.f32 %v226_v27, %v164_v22  ;;  %v48_v20 = vld [vmem:[#allocation2 + $0xb8] sm:$0xff]  ;;  %v180_v22 = vmul.f32 %v47_v16, %v47_v16 }
  0x15   :  { %v96_v33 = vadd.f32 %v95_v29, %v33_v24  ;;  %v228_v35 = vadd.f32 %v227_v31, %v165_v26  ;;  %v49_v24 = vld [vmem:[#allocation2 + $0xc0] sm:$0xff]  ;;  %v181_v26 = vmul.f32 %v48_v20, %v48_v20 }
  0x17   :  { %v97_v37 = vadd.f32 %v96_v33, %v34_v28  ;;  %v229_v39 = vadd.f32 %v228_v35, %v166_v30  ;;  %v50_v28 = vld [vmem:[#allocation2 + $0xc8] sm:$0xff]  ;;  %v182_v30 = vmul.f32 %v49_v24, %v49_v24 }
  0x19   :  { %v98_v41 = vadd.f32 %v97_v37, %v35_v32  ;;  %v230_v43 = vadd.f32 %v229_v39, %v167_v34  ;;  %v51_v32 = vld [vmem:[#allocation2 + $0xd0] sm:$0xff]  ;;  %v183_v34 = vmul.f32 %v50_v28, %v50_v28 }
  0x1b   :  { %v99_v45 = vadd.f32 %v98_v41, %v36_v36  ;;  %v231_v47 = vadd.f32 %v230_v43, %v168_v38  ;;  %v52_v36 = vld [vmem:[#allocation2 + $0xd8] sm:$0xff]  ;;  %v184_v38 = vmul.f32 %v51_v32, %v51_v32 }
  0x1d   :  { %v100_v49 = vadd.f32 %v99_v45, %v37_v40  ;;  %v232_v51 = vadd.f32 %v231_v47, %v169_v42  ;;  %v53_v40 = vld [vmem:[#allocation2 + $0xe0] sm:$0xff]  ;;  %v185_v42 = vmul.f32 %v52_v36, %v52_v36 }
  0x1f   :  { %v101_v53 = vadd.f32 %v100_v49, %v38_v44  ;;  %v233_v55 = vadd.f32 %v232_v51, %v170_v46  ;;  %v54_v44 = vld [vmem:[#allocation2 + $0xe8] sm:$0xff]  ;;  %v186_v46 = vmul.f32 %v53_v40, %v53_v40 }
  0x21   :  { %v102_v57 = vadd.f32 %v101_v53, %v39_v48  ;;  %v234_v59 = vadd.f32 %v233_v55, %v171_v50  ;;  %v55_v48 = vld [vmem:[#allocation2 + $0xf0] sm:$0xff]  ;;  %v187_v50 = vmul.f32 %v54_v44, %v54_v44 }
  0x23   :  { %v103_v61 = vadd.f32 %v102_v57, %v40_v52  ;;  %v235_v63 = vadd.f32 %v234_v59, %v172_v54  ;;  %v56_v52 = vld [vmem:[#allocation2 + $0xf8] sm:$0xff]  ;;  %v188_v54 = vmul.f32 %v55_v48, %v55_v48 }
  0x25   :  { %v104_v1 = vadd.f32 %v103_v61, %v41_v56  ;;  %v236_v3 = vadd.f32 %v235_v63, %v173_v58  ;;  %v57_v56 = vld [vmem:[#allocation2 + $0x100] sm:$0xff]  ;;  %v189_v58 = vmul.f32 %v56_v52, %v56_v52 }
  0x27   :  { %v105_v5 = vadd.f32 %v104_v1, %v42_v60  ;;  %v237_v7 = vadd.f32 %v236_v3, %v174_v62  ;;  %v58_v60 = vld [vmem:[#allocation2 + $0x108] sm:$0xff]  ;;  %v190_v62 = vmul.f32 %v57_v56, %v57_v56 }
  0x29   :  { %v106_v9 = vadd.f32 %v105_v5, %v43_v0  ;;  %v238_v11 = vadd.f32 %v237_v7, %v175_v2  ;;  %v59_v0 = vld [vmem:[#allocation2 + $0x110] sm:$0xff]  ;;  %v191_v2 = vmul.f32 %v58_v60, %v58_v60 }
  0x2b   :  { %v107_v13 = vadd.f32 %v106_v9, %v44_v4  ;;  %v239_v15 = vadd.f32 %v238_v11, %v176_v6  ;;  %v60_v4 = vld [vmem:[#allocation2 + $0x118] sm:$0xff]  ;;  %v192_v6 = vmul.f32 %v59_v0, %v59_v0 }
  0x2d   :  { %v108_v17 = vadd.f32 %v107_v13, %v45_v8  ;;  %v240_v19 = vadd.f32 %v239_v15, %v177_v10  ;;  %v61_v8 = vld [vmem:[#allocation2 + $0x120] sm:$0xff]  ;;  %v193_v10 = vmul.f32 %v60_v4, %v60_v4 }
  0x2f   :  { %v109_v21 = vadd.f32 %v108_v17, %v46_v12  ;;  %v241_v23 = vadd.f32 %v240_v19, %v178_v14  ;;  %v62_v12 = vld [vmem:[#allocation2 + $0x128] sm:$0xff]  ;;  %v194_v14 = vmul.f32 %v61_v8, %v61_v8 }
  0x31   :  { %v110_v25 = vadd.f32 %v109_v21, %v47_v16  ;;  %v242_v27 = vadd.f32 %v241_v23, %v179_v18  ;;  %v63_v16 = vld [vmem:[#allocation2 + $0x130] sm:$0xff]  ;;  %v195_v18 = vmul.f32 %v62_v12, %v62_v12 }
  0x33   :  { %v111_v29 = vadd.f32 %v110_v25, %v48_v20  ;;  %v243_v31 = vadd.f32 %v242_v27, %v180_v22  ;;  %v64_v20 = vld [vmem:[#allocation2 + $0x138] sm:$0xff]  ;;  %v196_v22 = vmul.f32 %v63_v16, %v63_v16 }
  0x35   :  { %v112_v33 = vadd.f32 %v111_v29, %v49_v24  ;;  %v244_v35 = vadd.f32 %v243_v31, %v181_v26  ;;  %v65_v24 = vld [vmem:[#allocation2 + $0x140] sm:$0xff]  ;;  %v197_v26 = vmul.f32 %v64_v20, %v64_v20 }
  0x37   :  { %v113_v37 = vadd.f32 %v112_v33, %v50_v28  ;;  %v245_v39 = vadd.f32 %v244_v35, %v182_v30  ;;  %v66_v28 = vld [vmem:[#allocation2 + $0x148] sm:$0xff]  ;;  %v198_v30 = vmul.f32 %v65_v24, %v65_v24 }
  0x39   :  { %v114_v41 = vadd.f32 %v113_v37, %v51_v32  ;;  %v246_v43 = vadd.f32 %v245_v39, %v183_v34  ;;  %v67_v32 = vld [vmem:[#allocation2 + $0x150] sm:$0xff]  ;;  %v199_v34 = vmul.f32 %v66_v28, %v66_v28 }
  0x3b   :  { %v115_v45 = vadd.f32 %v114_v41, %v52_v36  ;;  %v247_v47 = vadd.f32 %v246_v43, %v184_v38  ;;  %v68_v36 = vld [vmem:[#allocation2 + $0x158] sm:$0xff]  ;;  %v200_v38 = vmul.f32 %v67_v32, %v67_v32 }
  0x3d   :  { %v116_v49 = vadd.f32 %v115_v45, %v53_v40  ;;  %v248_v51 = vadd.f32 %v247_v47, %v185_v42  ;;  %v69_v40 = vld [vmem:[#allocation2 + $0x160] sm:$0xff]  ;;  %v201_v42 = vmul.f32 %v68_v36, %v68_v36 }
  0x3f   :  { %v117_v53 = vadd.f32 %v116_v49, %v54_v44  ;;  %v249_v55 = vadd.f32 %v248_v51, %v186_v46  ;;  %v70_v44 = vld [vmem:[#allocation2 + $0x168] sm:$0xff]  ;;  %v202_v46 = vmul.f32 %v69_v40, %v69_v40 }
  0x41   :  { %v118_v57 = vadd.f32 %v117_v53, %v55_v48  ;;  %v250_v59 = vadd.f32 %v249_v55, %v187_v50  ;;  %v71_v48 = vld [vmem:[#allocation2 + $0x170] sm:$0xff]  ;;  %v203_v50 = vmul.f32 %v70_v44, %v70_v44 }
  0x43   :  { %v119_v61 = vadd.f32 %v118_v57, %v56_v52  ;;  %v251_v63 = vadd.f32 %v250_v59, %v188_v54  ;;  %v72_v52 = vld [vmem:[#allocation2 + $0x178] sm:$0xff]  ;;  %v204_v54 = vmul.f32 %v71_v48, %v71_v48 }
  0x45   :  { %v120_v1 = vadd.f32 %v119_v61, %v57_v56  ;;  %v252_v3 = vadd.f32 %v251_v63, %v189_v58  ;;  %v73_v56 = vld [vmem:[#allocation2 + $0x180] sm:$0xff]  ;;  %v205_v58 = vmul.f32 %v72_v52, %v72_v52 }
  0x47   :  { %v121_v5 = vadd.f32 %v120_v1, %v58_v60  ;;  %v253_v7 = vadd.f32 %v252_v3, %v190_v62  ;;  %v74_v60 = vld [vmem:[#allocation2 + $0x188] sm:$0xff]  ;;  %v206_v62 = vmul.f32 %v73_v56, %v73_v56 }
  0x49   :  { %v122_v9 = vadd.f32 %v121_v5, %v59_v0  ;;  %v254_v11 = vadd.f32 %v253_v7, %v191_v2  ;;  %v75_v0 = vld [vmem:[#allocation2 + $0x190] sm:$0xff]  ;;  %v207_v2 = vmul.f32 %v74_v60, %v74_v60 }
  0x4b   :  { %v123_v13 = vadd.f32 %v122_v9, %v60_v4  ;;  %v255_v15 = vadd.f32 %v254_v11, %v192_v6  ;;  %v76_v4 = vld [vmem:[#allocation2 + $0x198] sm:$0xff]  ;;  %v208_v6 = vmul.f32 %v75_v0, %v75_v0 }
  0x4d   :  { %v124_v17 = vadd.f32 %v123_v13, %v61_v8  ;;  %v256_v19 = vadd.f32 %v255_v15, %v193_v10  ;;  %v77_v8 = vld [vmem:[#allocation2 + $0x1a0] sm:$0xff]  ;;  %v209_v10 = vmul.f32 %v76_v4, %v76_v4 }
  0x4f   :  { %v125_v21 = vadd.f32 %v124_v17, %v62_v12  ;;  %v257_v23 = vadd.f32 %v256_v19, %v194_v14  ;;  %v78_v12 = vld [vmem:[#allocation2 + $0x1a8] sm:$0xff]  ;;  %v210_v14 = vmul.f32 %v77_v8, %v77_v8 }
  0x51   :  { %v126_v25 = vadd.f32 %v125_v21, %v63_v16  ;;  %v258_v27 = vadd.f32 %v257_v23, %v195_v18  ;;  %v79_v16 = vld [vmem:[#allocation2 + $0x1b0] sm:$0xff]  ;;  %v211_v18 = vmul.f32 %v78_v12, %v78_v12 }
  0x53   :  { %v127_v29 = vadd.f32 %v126_v25, %v64_v20  ;;  %v259_v31 = vadd.f32 %v258_v27, %v196_v22  ;;  %v80_v20 = vld [vmem:[#allocation2 + $0x1b8] sm:$0xff]  ;;  %v212_v22 = vmul.f32 %v79_v16, %v79_v16 }
  0x55   :  { %v128_v33 = vadd.f32 %v127_v29, %v65_v24  ;;  %v260_v35 = vadd.f32 %v259_v31, %v197_v26  ;;  %v81_v24 = vld [vmem:[#allocation2 + $0x1c0] sm:$0xff]  ;;  %v213_v26 = vmul.f32 %v80_v20, %v80_v20 }
  0x57   :  { %v129_v37 = vadd.f32 %v128_v33, %v66_v28  ;;  %v261_v39 = vadd.f32 %v260_v35, %v198_v30  ;;  %v82_v28 = vld [vmem:[#allocation2 + $0x1c8] sm:$0xff]  ;;  %v214_v30 = vmul.f32 %v81_v24, %v81_v24 }
  0x59   :  { %v130_v41 = vadd.f32 %v129_v37, %v67_v32  ;;  %v262_v43 = vadd.f32 %v261_v39, %v199_v34  ;;  %v83_v32 = vld [vmem:[#allocation2 + $0x1d0] sm:$0xff]  ;;  %v215_v34 = vmul.f32 %v82_v28, %v82_v28 }
  0x5b   :  { %v131_v45 = vadd.f32 %v130_v41, %v68_v36  ;;  %v263_v47 = vadd.f32 %v262_v43, %v200_v38  ;;  %v84_v36 = vld [vmem:[#allocation2 + $0x1d8] sm:$0xff]  ;;  %v216_v38 = vmul.f32 %v83_v32, %v83_v32 }
  0x5d   :  { %v132_v49 = vadd.f32 %v131_v45, %v69_v40  ;;  %v264_v51 = vadd.f32 %v263_v47, %v201_v42  ;;  %v85_v40 = vld [vmem:[#allocation2 + $0x1e0] sm:$0xff]  ;;  %v217_v42 = vmul.f32 %v84_v36, %v84_v36 }
  0x5f   :  { %v133_v53 = vadd.f32 %v132_v49, %v70_v44  ;;  %v265_v55 = vadd.f32 %v264_v51, %v202_v46  ;;  %v86_v44 = vld [vmem:[#allocation2 + $0x1e8] sm:$0xff]  ;;  %v218_v46 = vmul.f32 %v85_v40, %v85_v40 }
  0x61   :  { %v134_v57 = vadd.f32 %v133_v53, %v71_v48  ;;  %v266_v59 = vadd.f32 %v265_v55, %v203_v50  ;;  %v87_v48 = vld [vmem:[#allocation2 + $0x1f0] sm:$0xff]  ;;  %v219_v50 = vmul.f32 %v86_v44, %v86_v44 }
  0x63   :  { %v135_v61 = vadd.f32 %v134_v57, %v72_v52  ;;  %v267_v63 = vadd.f32 %v266_v59, %v204_v54  ;;  %v88_v52 = vld [vmem:[#allocation2 + $0x1f8] sm:$0xff]  ;;  %v220_v54 = vmul.f32 %v87_v48, %v87_v48 }
  0x64   :  { %v221_v57 = vmul.f32 %v88_v52, %v88_v52 }
  0x65   :  { %v136_v1 = vadd.f32 %v135_v61, %v73_v56  ;;  %v268_v3 = vadd.f32 %v267_v63, %v205_v58 }
  0x67   :  { %v137_v5 = vadd.f32 %v136_v1, %v74_v60  ;;  %v269_v7 = vadd.f32 %v268_v3, %v206_v62 }
  0x69   :  { %v138_v9 = vadd.f32 %v137_v5, %v75_v0  ;;  %v270_v11 = vadd.f32 %v269_v7, %v207_v2  ;;  %v291_v2 = vlaneseq }
  0x6b   :  { %v139_v13 = vadd.f32 %v138_v9, %v76_v4  ;;  %v271_v15 = vadd.f32 %v270_v11, %v208_v6  ;;  %v292_v7 = vshrl.u32 %v291_v2, 7 }
  0x6d   :  { %v140_v17 = vadd.f32 %v139_v13, %v77_v8  ;;  %v272_v19 = vadd.f32 %v271_v15, %v209_v10  ;;  %vm294_vm0 = vcmp.eq.s32.totalorder %v292_v7, 1  ;;  %vm293_vm1 = vcmp.eq.s32.totalorder %v292_v7, 0 }
  0x6f   :  { %v141_v21 = vadd.f32 %v140_v17, %v78_v12  ;;  %v273_v23 = vadd.f32 %v272_v19, %v210_v14 }
  0x71   :  { %v142_v25 = vadd.f32 %v141_v21, %v79_v16  ;;  %v274_v27 = vadd.f32 %v273_v23, %v211_v18 }
  0x73   :  { %v143_v29 = vadd.f32 %v142_v25, %v80_v20  ;;  %v275_v31 = vadd.f32 %v274_v27, %v212_v22 }
  0x75   :  { %v144_v33 = vadd.f32 %v143_v29, %v81_v24  ;;  %v276_v35 = vadd.f32 %v275_v31, %v213_v26 }
  0x77   :  { %v145_v37 = vadd.f32 %v144_v33, %v82_v28  ;;  %v277_v39 = vadd.f32 %v276_v35, %v214_v30 }
  0x79   :  { %v146_v41 = vadd.f32 %v145_v37, %v83_v32  ;;  %v278_v43 = vadd.f32 %v277_v39, %v215_v34 }
  0x7b   :  { %v147_v45 = vadd.f32 %v146_v41, %v84_v36  ;;  %v279_v47 = vadd.f32 %v278_v43, %v216_v38 }
  0x7d   :  { %v148_v49 = vadd.f32 %v147_v45, %v85_v40  ;;  %v280_v51 = vadd.f32 %v279_v47, %v217_v42 }
  0x7f   :  { %v149_v53 = vadd.f32 %v148_v49, %v86_v44  ;;  %v281_v55 = vadd.f32 %v280_v51, %v218_v46 }
  0x81   :  { %v150_v56 = vadd.f32 %v149_v53, %v87_v48  ;;  %v282_v58 = vadd.f32 %v281_v55, %v219_v50 }
  0x83   :  { %v151_v59 = vadd.f32 %v150_v56, %v88_v52  ;;  %v283_v60 = vadd.f32 %v282_v58, %v220_v54 }
  0x85   :  { %v152_v61 = vrot.slane %v151_v59, 4  ;;  %v284_v62 = vadd.f32 %v283_v60, %v221_v57 }
  0x87   :  { %v153_v63 = vadd.f32 %v152_v61, %v151_v59  ;;  %v285_v0 = vrot.slane %v284_v62, 4 }
  0x89   :  { %v154_v1 = vrot.slane %v153_v63, 2  ;;  %v286_v3 = vadd.f32 %v285_v0, %v284_v62 }
  0x8b   :  { %v155_v4 = vadd.f32 %v154_v1, %v153_v63  ;;  %v287_v5 = vrot.slane %v286_v3, 2 }
  0x8d   :  { %v156_v6 = vrot.slane %v155_v4, 1  ;;  %v288_v8 = vadd.f32 %v287_v5, %v286_v3 }
  0x8f   :  { %v289_v9 = vrot.slane %v288_v8, 1  ;;  %v157_v10 = vadd.f32 %v156_v6, %v155_v4 }
  0x91   :  { %v290_v11 = vadd.f32 %v289_v9, %v288_v8 }
  0x93   :  { %v295_v12 = vsel %vm294_vm0, %v290_v11, 0.0 }
  0x94   :  { %v296_v13 = vsel %vm293_vm1, %v157_v10, %v295_v12 }
  0x95   :  { %297 = vst [vmem:[#allocation5] sm:$0xff] %v296_v13 }
  0x96   :  { %308 = dma.vmem_to_hbm [thread:$0]  %s304_s13, 128, %s306_s16, [#allocation4]  }
  0x97   :  { %369 = dma.done.wait [#allocation4], 128  }
  0x98   :  { %370 = vsyncadd [#allocation4], 4294967168 }
  0x99   :  { %313 = vsyncpa [#allocation3], 1 }
  0x9a   :  { %314 = vsyncpa [#allocation4], 1 }

</bundles_post_ra>
